<compile_context>
chip_gen: v7x
topology: tpu7x:2x2x1
jax: 0.10.0
libtpu: 0.0.40
codegen_flags: <defaults>
</compile_context>

<pallas_src>
import functools

import jax
import jax.numpy as jnp
from jax.experimental import pallas as pl
from jax.experimental.pallas import tpu as pltpu


def _round_up(x, m):
    return ((x + m - 1) // m) * m


def _scale_kernel(emb_ref, out_ref, *, scale):
    # Pure scale-copy (non-l2norm path).  Python-float scale is weakly typed,
    # so a bf16 table stays bf16 on the VPU (native bf16 VALU on v6e/v7x).
    out_ref[...] = (emb_ref[...] * scale).astype(out_ref.dtype)


def _l2norm_kernel(emb_ref, out_ref, *, groups, seq_len, tile_rows, mask_tail):
    # emb_ref / out_ref: (tile_rows, dim) tile.  Upcast to f32 for the
    # reduction only; scale == 1.0 in the l2norm branch so no multiply.
    e = emb_ref[...].astype(jnp.float32)
    if mask_tail:
        # Rows past seq_len in the final block can alias undefined VMEM
        # (only possible when seq_len == max_seq_len and the tile does not
        # divide it); zero them so rsqrt never sees garbage / NaN.  Those
        # rows are discarded by the clipped output writeback anyway.
        row = (jax.lax.broadcasted_iota(jnp.int32, e.shape, 0)
               + pl.program_id(0) * tile_rows)
        e = jnp.where(row < seq_len, e, 0.0)

    dim = e.shape[-1]
    d = dim // groups
    eps_sq = 1e-24  # == (F.normalize eps 1e-12) ** 2
    if groups == 1:
        # Direct lane-axis reduce; rsqrt goes to the EUP slot (multiply, not
        # divide), matching F.normalize's v / max(||v||, 1e-12).
        norm_sq = jnp.sum(e * e, axis=-1, keepdims=True)
        out_ref[...] = (e * jax.lax.rsqrt(jnp.maximum(norm_sq, eps_sq))
                        ).astype(out_ref.dtype)
    else:
        # Static unroll over groups; each normalized segment is written
        # straight to the output ref (no concatenate / extra tile buffer).
        for g in range(groups):
            seg = e[:, g * d:(g + 1) * d]
            norm_sq = jnp.sum(seg * seg, axis=-1, keepdims=True)
            out_ref[:, g * d:(g + 1) * d] = (
                seg * jax.lax.rsqrt(jnp.maximum(norm_sq, eps_sq))
            ).astype(out_ref.dtype)


def absolute_positional_embedding(embed_table, seq_len, *, l2norm_embed=False,
                                  groups=1,
                                  target_tile_bytes=4 * 1024 * 1024,
                                  core_parallel=False):
    """Pallas equivalent of AbsolutePositionalEmbedding.forward(x, pos=None).

    embed_table: (max_seq_len, dim) embedding weight.
    seq_len:     x.shape[1] from the PyTorch forward.
    Returns (seq_len, dim) positional embeddings.
    """
    max_seq_len, dim = embed_table.shape
    assert seq_len <= max_seq_len, (
        f"you are passing a sequence length of {seq_len} but your absolute "
        f"positional embedding has a max sequence length of {max_seq_len}")
    assert dim % groups == 0, (
        f"dim ({dim}) must be divisible by groups ({groups})")

    dtype = embed_table.dtype
    itemsize = jnp.dtype(dtype).itemsize
    sublane = max(8, 32 // itemsize)          # 8 f32 / 16 bf16 / 32 int8
    scale = 1.0 if l2norm_embed else dim ** (-0.5)

    # --- lane-dense fast path for the elementwise scale-copy ----------------
    # When dim is not a multiple of 128 the stores would be masked vst.msk;
    # reshape the problem to (rows*dim/128, 128) so every store is full-width.
    flatten = (not l2norm_embed
               and dim % 128 != 0
               and (max_seq_len * dim) % 128 == 0
               and (seq_len * dim) % 128 == 0)
    if flatten:
        view = embed_table.reshape(max_seq_len * dim // 128, 128)
        out_rows, out_cols = seq_len * dim // 128, 128
    else:
        view = embed_table
        out_rows, out_cols = seq_len, dim

    # --- tile-size selection by bytes ----------------------------------------
    bytes_per_row = out_cols * itemsize
    rows_needed = _round_up(out_rows, sublane)
    ts = max(sublane,
             (int(target_tile_bytes) // max(bytes_per_row, 1))
             // sublane * sublane)
    ts = min(ts, rows_needed)
    num_blocks = pl.cdiv(out_rows, ts)
    tile_bytes = ts * bytes_per_row
    # 2 input + 2 output pipeline buffers + headroom; cap well under v7x's
    # 64 MiB physical VMEM (128 MiB on v5e/v6e).
    vmem_limit = int(min(48 * 1024 * 1024,
                         max(32 * 1024 * 1024, 4 * tile_bytes + (4 << 20))))

    if num_blocks == 1:
        seq_sem = "arbitrary"
    elif core_parallel:
        seq_sem = pltpu.CORE_PARALLEL     # v7x: split rows across both TCs
    else:
        seq_sem = "parallel"
    # TODO(synk): auto-detect >1 TensorCore per chip (v7x) and default to
    # CORE_PARALLEL there; plain "parallel" is a no-op on single-TC v5e/v6e.

    if l2norm_embed:
        kernel = functools.partial(
            _l2norm_kernel, groups=groups, seq_len=seq_len, tile_rows=ts,
            mask_tail=bool(num_blocks * ts > max_seq_len))
        flops = 4 * seq_len * dim
        transcendentals = seq_len * groups
    else:
        kernel = functools.partial(_scale_kernel, scale=scale)
        flops = seq_len * dim
        transcendentals = 0

    out = pl.pallas_call(
        kernel,
        out_shape=jax.ShapeDtypeStruct((out_rows, out_cols), dtype),
        grid=(num_blocks,),
        in_specs=[pl.BlockSpec((ts, out_cols), lambda i: (i, 0))],
        out_specs=pl.BlockSpec((ts, out_cols), lambda i: (i, 0)),
        compiler_params=pltpu.CompilerParams(
            dimension_semantics=(seq_sem,),
            vmem_limit_bytes=vmem_limit),
        cost_estimate=pl.CostEstimate(
            flops=int(flops),
            transcendentals=int(transcendentals),
            bytes_accessed=int(2 * seq_len * dim * itemsize)),
    )(view)

    if flatten:
        out = out.reshape(seq_len, dim)
    return out


def _reference(embed_table, seq_len, *, l2norm_embed=False, groups=1):
    """Pure-JAX reference faithful to the PyTorch module (sqrt/div form)."""
    dim = embed_table.shape[1]
    scale = 1.0 if l2norm_embed else dim ** (-0.5)
    e = embed_table[:seq_len].astype(jnp.float32) * scale
    if l2norm_embed:
        eg = e.reshape(seq_len, groups, dim // groups)
        norm = jnp.sqrt(jnp.sum(eg * eg, axis=-1, keepdims=True))
        e = (eg / jnp.maximum(norm, 1e-12)).reshape(seq_len, dim)
    return e.astype(embed_table.dtype)


if __name__ == "__main__":
    # Small shapes consistent with the module: batch=2, seq=8, dim=32.
    batch, seq_len, dim = 2, 8, 32
    max_seq_len = 16

    key = jax.random.PRNGKey(0)
    k_x, k_emb = jax.random.split(key)

    # x only contributes its seq-len, exactly like the PyTorch forward.
    x = jax.random.normal(k_x, (batch, seq_len, dim), dtype=jnp.float32)
    embed_table = jax.random.normal(k_emb, (max_seq_len, dim),
                                    dtype=jnp.float32)

    # Default config: l2norm_embed=False -> scale = dim**-0.5 (lane-dense
    # flattened path since dim=32 < 128).
    out = jax.block_until_ready(
        absolute_positional_embedding(embed_table, x.shape[1]))
    ref = _reference(embed_table, x.shape[1])
    assert out.shape == (seq_len, dim)
    assert jnp.allclose(out, ref, atol=1e-6, rtol=1e-6)

    # l2norm_embed=True path (rsqrt vs sqrt/div: allow tiny tolerance).
    out_l2 = jax.block_until_ready(
        absolute_positional_embedding(embed_table, x.shape[1],
                                      l2norm_embed=True))
    ref_l2 = _reference(embed_table, x.shape[1], l2norm_embed=True)
    assert jnp.allclose(out_l2, ref_l2, atol=1e-5, rtol=1e-5)

    # Multi-block pipelined path (grid > 1, partial tail block, seq_len not a
    # multiple of the tile) via a tiny byte budget.
    msl2, sl2, dim2 = 64, 40, 32
    emb2 = jax.random.normal(jax.random.PRNGKey(1), (msl2, dim2),
                             dtype=jnp.float32)
    out2 = jax.block_until_ready(
        absolute_positional_embedding(emb2, sl2, target_tile_bytes=2048))
    ref2 = _reference(emb2, sl2)
    assert out2.shape == (sl2, dim2)
    assert jnp.allclose(out2, ref2, atol=1e-6, rtol=1e-6)

    # Grouped l2norm on the tiled (non-flattened) path.
    out2g = jax.block_until_ready(
        absolute_positional_embedding(emb2, sl2, l2norm_embed=True, groups=2,
                                      target_tile_bytes=2048))
    ref2g = _reference(emb2, sl2, l2norm_embed=True, groups=2)
    assert jnp.allclose(out2g, ref2g, atol=1e-5, rtol=1e-5)

    # seq_len == max_seq_len with a non-dividing tile -> exercises the l2norm
    # tail-masking (undefined-VMEM) fix.
    emb3 = jax.random.normal(jax.random.PRNGKey(2), (40, 32),
                             dtype=jnp.float32)
    out3 = jax.block_until_ready(
        absolute_positional_embedding(emb3, 40, l2norm_embed=True,
                                      target_tile_bytes=2048))
    ref3 = _reference(emb3, 40, l2norm_embed=True)
    assert jnp.allclose(out3, ref3, atol=1e-5, rtol=1e-5)

    # dim multiple of 128 -> regular (already lane-dense) non-l2norm path.
    emb4 = jax.random.normal(jax.random.PRNGKey(3), (16, 128),
                             dtype=jnp.float32)
    out4 = jax.block_until_ready(absolute_positional_embedding(emb4, 8))
    ref4 = _reference(emb4, 8)
    assert jnp.allclose(out4, ref4, atol=1e-6, rtol=1e-6)

    # bf16 table -> 16-row sublane multiple, native-dtype multiply.
    emb5 = jax.random.normal(jax.random.PRNGKey(4), (max_seq_len, dim),
                             dtype=jnp.bfloat16)
    out5 = jax.block_until_ready(absolute_positional_embedding(emb5, seq_len))
    ref5 = _reference(emb5, seq_len)
    assert jnp.allclose(out5.astype(jnp.float32), ref5.astype(jnp.float32),
                        atol=1e-2, rtol=1e-2)

    print("KERNEL_OK")
</pallas_src>

<mosaic_0001>
module attributes {stable_mosaic.version = 11 : i64} {
  func.func @_scale_kernel(%arg0: i32, %arg1: memref<8x128xf32, #tpu.memory_space<vmem>>, %arg2: memref<8x128xf32, #tpu.memory_space<vmem>>) attributes {dimension_semantics = [#tpu.dimension_semantics<arbitrary>], iteration_bounds = array<i64: 1>, scalar_prefetch = 0 : i64, scratch_operands = 0 : i64, tpu.core_type = #tpu.core_type<tc>, window_params = [{transform_indices = @transform_0, window_bounds = array<i64: 8, 128>}, {transform_indices = @transform_1, window_bounds = array<i64: 8, 128>}]} {
    %c0 = arith.constant 0 : index
    %c0_0 = arith.constant 0 : index
    %0 = vector.load %arg1[%c0, %c0_0] : memref<8x128xf32, #tpu.memory_space<vmem>>, vector<8x128xf32>
    %cst = arith.constant 0.176776692 : f32
    %1 = vector.broadcast %cst : f32 to vector<8x128xf32>
    %2 = arith.mulf %0, %1 : vector<8x128xf32>
    %c0_1 = arith.constant 0 : index
    %c0_2 = arith.constant 0 : index
    %3 = vector.load %arg2[%c0_1, %c0_2] : memref<8x128xf32, #tpu.memory_space<vmem>>, vector<8x128xf32>
    tpu.vector_store %arg2[%c0_1, %c0_2], %2 {strides = array<i32>} : memref<8x128xf32, #tpu.memory_space<vmem>>, vector<8x128xf32>,
    return
  }
  func.func @transform_0(%arg0: i32) -> (i32, i32) {
    %c0_i32 = arith.constant 0 : i32
    %c0_i32_0 = arith.constant 0 : i32
    return %arg0, %c0_i32 : i32, i32
  }
  func.func @transform_1(%arg0: i32) -> (i32, i32) {
    %c0_i32 = arith.constant 0 : i32
    %c0_i32_0 = arith.constant 0 : i32
    return %arg0, %c0_i32 : i32, i32
  }
}

</mosaic_0001>

<bundles_post_ra>
// kernel: tpu_custom_call.1
= control target key start
LH: loop header
LB: loop body
LE: loop exit
PB: predicated region body
PF: predicated region fallthrough
CT: control target
= control target key end

     0   :  { %6 = vsyncpa [#allocation3], 0  ;;  %s137_s0 = inlined_call_operand.hbm [shape: f32[4,128], index: 0, kind: input, shape index: {}]   ;;  %s138_s1 = inlined_call_operand.hbm [shape: f32[2,128], index: 1, kind: output, shape index: {}]  }
   0x1   :  { %7 = vsyncpa [#allocation4], 0 }
   0x2   :  { %12 = vsyncadd [#allocation3], 64  ;;  %s97_s6 = smov [#allocation2]   ;;  %s49_s10 = scalar_lea.hbm %s137_s0, 64 }
   0x3   :  { %s13_s7 = sshll.u32 %s97_s6, 4  ;;  %p50_p0 = scmp.ne.s32.totalorder %s137_s0, %s49_s10  ;;  %s14_s7 = int_to_ptr.vmem [resolvable:$true] %s13_s7 }
   0x4   :  { %p53_p1 = scmp.lt.u32.totalorder %s49_s10, %s137_s0 }
   0x6   :  { %p55_p2 = pnand %p53_p1, %p50_p0 }
   0x8   :  { %58 = shalt.err (!%p55_p2)
}
   0x9   :  { %s59_s15 = scalar_lea.vmem %s14_s7, 64  ;;  %s63_s16 = scalar_lea.vmem %s14_s7, 128 }
   0xa   :  { %p60_p3 = scmp.ne.s32.totalorder %s14_s7, %s59_s15  ;;  %p64_p4 = scmp.lt.s32.totalorder %s14_s7, %s14_s7 }
   0xb   :  { %p65_p5 = scmp.lt.s32.totalorder %s63_s16, %s59_s15 }
   0xd   :  { %p66_p6 = por %p65_p5, %p64_p4 }
   0xf   :  { %p67_p7 = pnand %p66_p6, %p60_p3 }
  0x11   :  { %70 = shalt.err (!%p67_p7)
}
  0x12   :  { %s98_s17 = smov 64   ;;  %s99_s18 = smov 4  }
  0x13   :  { %19 = dma.hbm_to_vmem [thread:$0]  %s137_s0, 64, %s14_s7, [#allocation3], %s98_s17, %s98_s17, %s99_s18  }
  0x14   :  { %93 = dma.done.wait [#allocation3], 128  }
  0x15   :  { %94 = vsyncadd [#allocation3], 4294967168  ;;  %v23_v0 = vld [vmem:[#allocation2] sm:$0xff] }
  0x16   :  { %v24_v1 = vmul.f32 0.17677669, %v23_v0 }
  0x18   :  { %25 = vst [vmem:[#allocation5] sm:$0xff] %v24_v1 }
  0x19   :  { %30 = vsyncadd [#allocation4], 96  ;;  %s100_s21 = smov [#allocation5]  }
  0x1a   :  { %s31_s22 = sshll.u32 %s100_s21, 4  ;;  %s32_s22 = int_to_ptr.vmem [resolvable:$true] %s31_s22 }
  0x1b   :  { %s71_s23 = scalar_lea.vmem %s32_s22, 32  ;;  %s75_s24 = scalar_lea.vmem %s32_s22, 128 }
  0x1c   :  { %p72_p8 = scmp.ne.s32.totalorder %s32_s22, %s71_s23  ;;  %p76_p9 = scmp.lt.s32.totalorder %s32_s22, %s32_s22 }
  0x1d   :  { %p77_p10 = scmp.lt.s32.totalorder %s75_s24, %s71_s23 }
  0x1f   :  { %p78_p11 = por %p77_p10, %p76_p9 }
  0x21   :  { %p79_p12 = pnand %p78_p11, %p72_p8 }
  0x23   :  { %82 = shalt.err (!%p79_p12)
}
  0x24   :  { %s83_s0 = scalar_lea.hbm %s138_s1, 32 }
  0x25   :  { %p84_p13 = scmp.ne.s32.totalorder %s138_s1, %s83_s0  ;;  %p87_p0 = scmp.lt.u32.totalorder %s83_s0, %s138_s1 }
  0x27   :  { %p89_p1 = pnand %p87_p0, %p84_p13 }
  0x29   :  { %92 = shalt.err (!%p89_p1)
}
  0x2a   :  { %s101_s2 = smov 32   ;;  %s102_s3 = smov 2  }
  0x2b   :  { %37 = dma.vmem_to_hbm [thread:$0]  %s32_s22, 32, %s138_s1, [#allocation4], %s101_s2, %s101_s2, %s102_s3  }
  0x2c   :  { %95 = dma.done.wait [#allocation4], 128  }
  0x2d   :  { %96 = vsyncadd [#allocation4], 4294967168 }
  0x2e   :  { %41 = vsyncpa [#allocation3], 1 }
  0x2f   :  { %42 = vsyncpa [#allocation4], 1 }

</bundles_post_ra>
